<compile_context>
chip_gen: v7x
topology: tpu7x:2x2x1
jax: 0.10.0
libtpu: 0.0.40
codegen_flags: <defaults>
</compile_context>

<pallas_src>
import jax
import jax.numpy as jnp
from jax.experimental import pallas as pl
from jax.experimental.pallas import tpu as pltpu


def _round_up(x, m):
    return ((x + m - 1) // m) * m


def _vmem_limit_bytes():
    # v5e/v6e: 128 MiB physical VMEM; v7x: 64 MiB per TensorCore.
    try:
        phys = int(pltpu.get_tpu_info().vmem_capacity_bytes)
    except Exception:
        phys = 64 * 1024 * 1024  # conservative fallback (v7x)
    return max(32 * 1024 * 1024, (phys * 3) // 4)


def _make_biaffine_kernel(d1, d2, bias0, bias1):
    """d1/d2 are the *un-augmented* feature dims; bias0/bias1 are static."""

    def kernel(x1_ref, u_ref, x2_ref, o_ref, t_ref):
        # T = x1'[b, i1-tile] @ Ut[o] depends only on (b, o, i1): compute it
        # once at the first L2 tile (i2 == 0, innermost sequential axis) and
        # reuse it from VMEM scratch for every other i2 step.
        @pl.when(pl.program_id(3) == 0)
        def _():
            u = u_ref[0]                                   # (D1p, D2p) native dtype
            t = jnp.dot(x1_ref[0], u[:d1, :],
                        preferred_element_type=jnp.float32)  # (TL1, D2p) f32 acc
            if bias0:
                # ones-column of x1' folded in: + Ut[o, D1, :]
                t = t + u[d1:d1 + 1, :].astype(jnp.float32)
            t_ref[...] = t.astype(t_ref.dtype)

        t = t_ref[...]                                     # (TL1, D2p) native dtype
        x2 = x2_ref[0]                                     # (TL2, D2)  native dtype
        # out[i, j] = sum_d2 T[i, d2] * x2[j, d2]   (MXU, f32 accumulation)
        out = jax.lax.dot_general(
            t[:, :d2], x2,
            dimension_numbers=(((1,), (1,)), ((), ())),
            preferred_element_type=jnp.float32)            # (TL1, TL2)
        if bias1:
            # ones-column of x2' folded in: + T[:, D2] broadcast over j.
            out = out + t[:, d2:d2 + 1].astype(jnp.float32)
        o_ref[0, 0] = out.astype(o_ref.dtype)

    return kernel


def biaffine_pallas(input1, input2, weight, out_feature_dim, bias=(True, True)):
    """BiaffineModule.forward: returns (B, len1, len2, out_feature_dim)."""
    B, L1, D1 = input1.shape
    B2, L2, D2 = input2.shape
    assert B == B2
    O = out_feature_dim
    dt = input1.dtype
    D1p = D1 + int(bias[0])
    D2p = D2 + int(bias[1])
    assert weight.shape == (O * D2p, D1p), weight.shape

    # Ut[o, d1, d2] = W[o*D2p + d2, d1]  (one-time, tiny weight prep).  Cast
    # to the activation dtype so both matmuls run the MXU-native path (bf16
    # fast path when inputs are bf16), with f32 accumulation in-kernel.
    ut = jnp.transpose(weight.reshape(O, D2p, D1p), (0, 2, 1)).astype(dt)
    input2 = input2.astype(dt)

    in_b = jnp.dtype(dt).itemsize
    vmem_limit = _vmem_limit_bytes()

    # Fixed large tiles + cdiv grid; ragged last blocks along L1/L2 are safely
    # masked by Pallas (they are not contraction dims).  Shrink if the block
    # working set would not fit the per-generation VMEM budget.
    TL1 = min(512, _round_up(L1, 8))       # sublane dim: multiple of 8
    TL2 = min(512, _round_up(L2, 128))     # lane dim: multiple of 128

    def footprint(t1, t2):
        # double-buffered input/output blocks + the T scratch
        return (2 * in_b * (t1 * D1 + D1p * D2p + t2 * D2)
                + 2 * in_b * t1 * t2 + in_b * t1 * D2p)

    budget = int(0.7 * vmem_limit)
    while footprint(TL1, TL2) > budget:
        if TL1 > 64:
            TL1 = max(64, TL1 // 2)
        elif TL2 > 128:
            TL2 = max(128, TL2 // 2)
        else:
            break

    nI1 = pl.cdiv(L1, TL1)
    nI2 = pl.cdiv(L2, TL2)
    # o outermost so the weight block index never changes across (b, i1, i2)
    # and Ut[o] is re-DMA'd only O times in total (not O*B times).
    grid = (O, B, nI1, nI2)

    flops = 2.0 * B * O * L1 * D1p * D2p + 2.0 * B * O * L1 * L2 * D2
    bytes_accessed = (in_b * O * B * L1 * D1            # x1 streamed once per o
                      + in_b * O * D1p * D2p            # weight, resident per o
                      + in_b * O * nI1 * B * L2 * D2    # x2 re-read per (o, i1)
                      + in_b * B * O * L1 * L2)         # output write

    kernel = _make_biaffine_kernel(D1, D2, bool(bias[0]), bool(bias[1]))

    out = pl.pallas_call(
        kernel,
        out_shape=jax.ShapeDtypeStruct((B, O, L1, L2), dt),
        grid_spec=pltpu.PrefetchScalarGridSpec(
            num_scalar_prefetch=0,
            grid=grid,
            in_specs=[
                pl.BlockSpec((1, TL1, D1), lambda o, b, i1, i2: (b, i1, 0)),
                pl.BlockSpec((1, D1p, D2p), lambda o, b, i1, i2: (o, 0, 0)),
                pl.BlockSpec((1, TL2, D2), lambda o, b, i1, i2: (b, i2, 0)),
            ],
            out_specs=pl.BlockSpec(
                (1, 1, TL1, TL2), lambda o, b, i1, i2: (b, o, i1, i2)),
            scratch_shapes=[pltpu.VMEM((TL1, D2p), dt)],
        ),
        compiler_params=pltpu.CompilerParams(
            # i2 must stay the innermost, sequentially-iterated axis so the
            # T-scratch reuse (recomputed when program_id(3) == 0) is valid
            # per TensorCore; (o, b, i1) are megacore-parallel.
            dimension_semantics=("parallel", "parallel", "parallel", "arbitrary"),
            vmem_limit_bytes=int(vmem_limit),
        ),
        cost_estimate=pl.CostEstimate(
            flops=int(flops),
            transcendentals=0,
            bytes_accessed=int(bytes_accessed),
        ),
    )(input1, ut, input2)

    # Module contract is (B, L1, L2, O).  The kernel writes the lane-dense
    # (B, O, L1, L2) slab (O≈4 on the lane axis would force masked 4-lane
    # stores); drop this transpose if a downstream consumer can take
    # (B, O, L1, L2) directly.
    return jnp.transpose(out, (0, 2, 3, 1))


def biaffine_ref(input1, input2, weight, out_feature_dim, bias=(True, True)):
    """Pure-JAX reference mirroring the PyTorch forward exactly."""
    B, L1, D1 = input1.shape
    _, L2, D2 = input2.shape
    if bias[0]:
        input1 = jnp.concatenate(
            [input1, jnp.ones((B, L1, 1), input1.dtype)], axis=2)
        D1 += 1
    if bias[1]:
        # The original PyTorch code references an undefined `ones2`; the clear
        # intent is to append a ones column to input2, implemented here.
        input2 = jnp.concatenate(
            [input2, jnp.ones((B, L2, 1), input2.dtype)], axis=2)
        D2 += 1
    affine = jnp.einsum('bld,kd->blk', input1, weight,
                        precision=jax.lax.Precision.HIGHEST)   # (B, L1, O*D2)
    affine = affine.reshape(B, L1 * out_feature_dim, D2)
    bi = jnp.einsum('bkd,bjd->bjk', affine, input2,
                    precision=jax.lax.Precision.HIGHEST)       # (B, L2, L1*O)
    bi = bi.reshape(B, L2, L1, out_feature_dim)
    return jnp.transpose(bi, (0, 2, 1, 3))                     # (B, L1, L2, O)


if __name__ == "__main__":
    key = jax.random.PRNGKey(0)
    k1, k2, k3 = jax.random.split(key, 3)

    batch, len1, len2 = 2, 8, 8
    in1_dim, in2_dim, out_dim = 32, 32, 4
    bias = (True, True)

    input1 = jax.random.normal(k1, (batch, len1, in1_dim), dtype=jnp.float32)
    input2 = jax.random.normal(k2, (batch, len2, in2_dim), dtype=jnp.float32)

    lin_in = in1_dim + int(bias[0])
    lin_out = out_dim * (in2_dim + int(bias[1]))
    # Deterministic stand-in for the bias-free nn.Linear weight.
    weight = 0.1 * jax.random.normal(k3, (lin_out, lin_in), dtype=jnp.float32)

    out = biaffine_pallas(input1, input2, weight, out_dim, bias=bias)
    out = jax.block_until_ready(out)

    ref = biaffine_ref(input1, input2, weight, out_dim, bias=bias)
    assert out.shape == (batch, len1, len2, out_dim), out.shape
    max_err = float(jnp.max(jnp.abs(out - ref)))
    assert jnp.allclose(out, ref, atol=1e-2, rtol=1e-2), max_err

    print("KERNEL_OK")
</pallas_src>

<mosaic_0001>
module attributes {stable_mosaic.version = 11 : i64} {
  func.func @kernel(%arg0: i32, %arg1: i32, %arg2: i32, %arg3: i32, %arg4: memref<1x8x32xf32, #tpu.memory_space<vmem>>, %arg5: memref<1x33x33xf32, #tpu.memory_space<vmem>>, %arg6: memref<1x128x32xf32, #tpu.memory_space<vmem>>, %arg7: memref<1x1x8x128xf32, #tpu.memory_space<vmem>>, %arg8: memref<8x33xf32, #tpu.memory_space<vmem>>) attributes {dimension_semantics = [#tpu.dimension_semantics<parallel>, #tpu.dimension_semantics<parallel>, #tpu.dimension_semantics<parallel>, #tpu.dimension_semantics<arbitrary>], iteration_bounds = array<i64: 4, 2, 1, 1>, scalar_prefetch = 0 : i64, scratch_operands = 1 : i64, tpu.core_type = #tpu.core_type<tc>, window_params = [{transform_indices = @transform_0, window_bounds = array<i64: 1, 8, 32>}, {transform_indices = @transform_1, window_bounds = array<i64: 1, 33, 33>}, {transform_indices = @transform_2, window_bounds = array<i64: 1, 128, 32>}, {transform_indices = @transform_3, window_bounds = array<i64: 1, 1, 8, 128>}]} {
    %c0_i32 = arith.constant 0 : i32
    %0 = arith.cmpi eq, %arg3, %c0_i32 : i32
    %1 = arith.extui %0 : i1 to i32
    %c0_i32_0 = arith.constant 0 : i32
    %2 = arith.cmpi ne, %1, %c0_i32_0 : i32
    scf.if %2 {
      %c0_9 = arith.constant 0 : index
      %c0_10 = arith.constant 0 : index
      %c0_11 = arith.constant 0 : index
      %14 = vector.load %arg5[%c0_9, %c0_10, %c0_11] : memref<1x33x33xf32, #tpu.memory_space<vmem>>, vector<1x33x33xf32>
      %15 = vector.shape_cast %14 : vector<1x33x33xf32> to vector<33x33xf32>
      %c0_12 = arith.constant 0 : index
      %c0_13 = arith.constant 0 : index
      %c0_14 = arith.constant 0 : index
      %16 = vector.load %arg4[%c0_12, %c0_13, %c0_14] : memref<1x8x32xf32, #tpu.memory_space<vmem>>, vector<1x8x32xf32>
      %17 = vector.shape_cast %16 : vector<1x8x32xf32> to vector<8x32xf32>
      %18 = vector.extract_strided_slice %15 {offsets = [0, 0], sizes = [32, 33], strides = [1, 1]} : vector<33x33xf32> to vector<32x33xf32>
      %cst_15 = arith.constant dense<0.000000e+00> : vector<8x33xf32>
      %19 = tpu.matmul %17, %18, %cst_15 {dimension_numbers = #tpu.dot_dimension_numbers<[1], [0], [0], [1], [0, 0, 1, 1], [], []>} : vector<8x32xf32>, vector<32x33xf32>, vector<8x33xf32> -> vector<8x33xf32>
      %20 = vector.extract_strided_slice %15 {offsets = [32, 0], sizes = [1, 33], strides = [1, 1]} : vector<33x33xf32> to vector<1x33xf32>
      %21 = vector.broadcast %20 : vector<1x33xf32> to vector<8x33xf32>
      %22 = arith.addf %19, %21 : vector<8x33xf32>
      %c0_16 = arith.constant 0 : index
      %c0_17 = arith.constant 0 : index
      %23 = vector.load %arg8[%c0_16, %c0_17] : memref<8x33xf32, #tpu.memory_space<vmem>>, vector<8x33xf32>
      tpu.vector_store %arg8[%c0_16, %c0_17], %22 {strides = array<i32>} : memref<8x33xf32, #tpu.memory_space<vmem>>, vector<8x33xf32>,
    } else {
    }
    %c0 = arith.constant 0 : index
    %c0_1 = arith.constant 0 : index
    %3 = vector.load %arg8[%c0, %c0_1] : memref<8x33xf32, #tpu.memory_space<vmem>>, vector<8x33xf32>
    %c0_2 = arith.constant 0 : index
    %c0_3 = arith.constant 0 : index
    %c0_4 = arith.constant 0 : index
    %4 = vector.load %arg6[%c0_2, %c0_3, %c0_4] : memref<1x128x32xf32, #tpu.memory_space<vmem>>, vector<1x128x32xf32>
    %5 = vector.shape_cast %4 : vector<1x128x32xf32> to vector<128x32xf32>
    %6 = vector.extract_strided_slice %3 {offsets = [0, 0], sizes = [8, 32], strides = [1, 1]} : vector<8x33xf32> to vector<8x32xf32>
    %cst = arith.constant dense<0.000000e+00> : vector<8x128xf32>
    %7 = tpu.matmul %6, %5, %cst {dimension_numbers = #tpu.dot_dimension_numbers<[1], [1], [0], [0], [0, 0, 1, 0], [], []>} : vector<8x32xf32>, vector<128x32xf32>, vector<8x128xf32> -> vector<8x128xf32>
    %8 = vector.extract_strided_slice %3 {offsets = [0, 32], sizes = [8, 1], strides = [1, 1]} : vector<8x33xf32> to vector<8x1xf32>
    %9 = vector.broadcast %8 : vector<8x1xf32> to vector<8x128xf32>
    %10 = arith.addf %7, %9 : vector<8x128xf32>
    %c0_5 = arith.constant 0 : index
    %c0_6 = arith.constant 0 : index
    %c0_7 = arith.constant 0 : index
    %c0_8 = arith.constant 0 : index
    %11 = vector.load %arg7[%c0_5, %c0_6, %c0_7, %c0_8] : memref<1x1x8x128xf32, #tpu.memory_space<vmem>>, vector<1x1x8x128xf32>
    %12 = vector.shape_cast %11 : vector<1x1x8x128xf32> to vector<8x128xf32>
    %13 = vector.shape_cast %10 : vector<8x128xf32> to vector<1x1x8x128xf32>
    tpu.vector_store %arg7[%c0_5, %c0_6, %c0_7, %c0_8], %13 {strides = array<i32>} : memref<1x1x8x128xf32, #tpu.memory_space<vmem>>, vector<1x1x8x128xf32>,
    return
  }
  func.func @transform_0(%arg0: i32, %arg1: i32, %arg2: i32, %arg3: i32) -> (i32, i32, i32) {
    %c0_i32 = arith.constant 0 : i32
    %c0_i32_0 = arith.constant 0 : i32
    return %arg1, %arg2, %c0_i32 : i32, i32, i32
  }
  func.func @transform_1(%arg0: i32, %arg1: i32, %arg2: i32, %arg3: i32) -> (i32, i32, i32) {
    %c0_i32 = arith.constant 0 : i32
    %c0_i32_0 = arith.constant 0 : i32
    %c0_i32_1 = arith.constant 0 : i32
    return %arg0, %c0_i32, %c0_i32_0 : i32, i32, i32
  }
  func.func @transform_2(%arg0: i32, %arg1: i32, %arg2: i32, %arg3: i32) -> (i32, i32, i32) {
    %c0_i32 = arith.constant 0 : i32
    %c0_i32_0 = arith.constant 0 : i32
    return %arg1, %arg3, %c0_i32 : i32, i32, i32
  }
  func.func @transform_3(%arg0: i32, %arg1: i32, %arg2: i32, %arg3: i32) -> (i32, i32, i32, i32) {
    %c0_i32 = arith.constant 0 : i32
    return %arg1, %arg0, %arg2, %arg3 : i32, i32, i32, i32
  }
}

</mosaic_0001>

<bundles_post_ra>
// kernel: tpu_custom_call.1
= control target key start
LH: loop header
LB: loop body
LE: loop exit
PB: predicated region body
PF: predicated region fallthrough
CT: control target
= control target key end

     0   :  { %8 = vsyncpa [#allocation4], 0  ;;  %s1163_s0 = inlined_call_operand.vmem [shape: f32[2,8,32], index: 0, kind: input, shape index: {}]   ;;  %s1164_s1 = inlined_call_operand.vmem [shape: f32[4,33,33], index: 1, kind: input, shape index: {}]   ;;  %s1165_s2 = inlined_call_operand.vmem [shape: f32[2,8,32], index: 2, kind: input, shape index: {}]   ;;  %s1166_s3 = inlined_call_operand.hbm [shape: f32[2,4,8,8], index: 3, kind: output, shape index: {}]  }
   0x1   :  { %10 = vsyncpa [#allocation4 + $0x1], 0  ;;  %s971_s12 = smov 0   ;;  %s973_s13 = smov 0  }
   0x2   :  { %s975_s14 = smov 0   ;;  %s977_s15 = smov 0  }
   0x3   :  { %s979_s16 = smov 0   ;;  %s981_s17 = smov 0  }
   0x4   :  { %s983_s18 = smov 0   ;;  %s985_s19 = smov 0  }
   0x5 LB: > { %s634_s20 = sadd.s32 4294967295, %s944_s19   ;;  %s635_s21 = sadd.s32 4294967294, %s944_s19   ;;  %s944_s19 = sphi %s985_s19, %s16_s19   ;;  %s940_s18 = sphi %s983_s18, %s1177_s18   ;;  %s936_s17 = sphi %s981_s17, %s1176_s17   ;;  %s932_s16 = sphi %s979_s16, %s1175_s16   ;;  %s928_s15 = sphi %s977_s15, %s1174_s15   ;;  %s924_s14 = sphi %s975_s14, %s1173_s14   ;;  %s920_s13 = sphi %s973_s13, %s1172_s13   ;;  %s916_s12 = sphi %s971_s12, %s1171_s12  }
   0x6   : > { %s38_s22 = sadd.s32 1, %s936_s17  ;;  %s42_s23 = sadd.s32 1, %s940_s18 }
   0x7   : > { %p40_p0 = scmp.ge.s32.totalorder %s38_s22, 2  ;;  %p147_p1 = scmp.ne.s32.totalorder %s924_s14, %s920_s13 }
   0x8   : > { %p148_p2 = scmp.eq.s32.totalorder %s634_s20, 7  ;;  %p153_p5 = scmp.ne.s32.totalorder %s920_s13, %s916_s12 }
   0x9   : > { %s1179_s22 = smov (%p40_p0, %s38_s22), 0  ;;  %s1181_s23 = smov (!%p40_p0, %s42_s23), %s940_s18 }
   0xa   : > { %s128_s24 = ssub.s32 %s936_s17, %s1179_s22  ;;  %p1022_p3 = por %p148_p2, %p147_p1 }
   0xb   : > { %p44_p4 = scmp.ge.s32.totalorder %s1181_s23, 4  ;;  %p154_p6 = scmp.eq.s32.totalorder %s635_s21, 7 }
   0xc   : > { %p638_p7 = scmp.ge.s32.totalorder %s944_s19, 1  ;;  %p206_p9 = scmp.lt.s32.totalorder %s944_s19, 9 }
   0xd   : > { %s1183_s23 = smov (%p44_p4, %s1181_s23), 0  ;;  %p1031_p8 = por %p154_p6, %p153_p5 }
   0xe   : > { %s129_s27 = ssub.s32 %s940_s18, %s1183_s23  ;;  %s137_s28 = sadd.s32 1, %s924_s14 }
   0xf   : > { %s130_s29 = sor.u32 %s129_s27, %s128_s24  ;;  %p207_p10 = pnand %p638_p7, %p206_p9 }
  0x10   : > { %p135_p11 = scmp.eq.s32.totalorder %s130_s29, 0  ;;  %p254_p12 = scmp.lt.s32.totalorder (!%p207_p10), %s932_s16, 3  ;;  %v946_v0 = vmov (!%p207_p10), 0.0|0.0   ;;  %vm947_vm0 = vmmov (!%p207_p10), 0   ;;  %v948_v1 = vmov (!%p207_p10), 0.0   ;;  %vm286_vm1 = vcmask (!%p207_p10), 261120  }
  0x11   : > { %210 = sbr.rel (%p207_p10) target bundleno = 489 (0x1e9), region = 32  ;;  %p247_p13 = scmp.lt.s32.totalorder (!%p207_p10), %s928_s15, 1  ;;  %735 = vmatprep.subr.bf16.mxu0 (!%p207_p10), %v946_v0  ;;  %697 = vmatprep.mubr.msk.f32.mxu0 (!%p207_p10), %vm947_vm0, %v948_v1  ;;  %vm1063_vm2 = vmpackc.low (!%p207_p10), %vm286_vm1, %vm286_vm1  ;;  %v949_v34 = vmov (!%p207_p10), 32   ;;  %vm360_vm3 = vcmask (!%p207_p10), 269312  }
  0x12   : > { %s1040_s30 = scalar_select %p135_p11, %s924_s14, %s137_s28  }
  0x13   : > { %741 = vmatprep.subr.bf16.mxu1 (!%p207_p10), %v946_v0  ;;  %732 = vmatprep.mubr.msk.f32.mxu1 (!%p207_p10), %vm947_vm0, %v948_v1  ;;  %s244_s29 = sand.u32 (!%p207_p10), 1, %s920_s13  }
  0x14   : > { %849 = vset.pattern.permute.xlu0 (!%p207_p10), %v949_v34 }
  0x18   : > { %s255_s4 = scalar_select %p254_p12, %s932_s16, 3 }
  0x19   : > { %s248_s5 = scalar_select %p247_p13, %s928_s15, 1 }
  0x1a   : > { %s773_s6 = smul.u32 40, %s255_s4  ;;  %s639_s4 = sshll.u32 %s244_s29, 3 }
  0x1b   : > { %s640_s10 = sshll.u32 %s248_s5, 3  ;;  %s663_s5 = sshll.u32 %s928_s15, 2 }
  0x1c   : > { %s1049_s9 = scalar_lea.vmem %s1164_s1, %s773_s6  ;;  %s1057_s21 = scalar_lea.vmem %s1165_s2, %s640_s10 }
  0x1d   : > { %v276_v2 = vld [vmem:[%s1049_s9] sm:$0xff]  ;;  %v277_v3 = vld [vmem:[%s1049_s9 + $0x8] sm:$0xff]  ;;  %v278_v4 = vld [vmem:[%s1049_s9 + $0x10] sm:$0xff]  ;;  %s253_s28 = scalar_lea.vmem %s1163_s0, %s640_s10  ;;  %s520_s6 = sadd.s32 %s932_s16, %s663_s5 }
  0x1e   : > { %v736_v5 = vpack.c.bf16 %v277_v3, %v276_v2  ;;  %v279_v6 = vld [vmem:[%s1049_s9 + $0x18] sm:$0xff]  ;;  %v363_v7 = vld [vmem:[%s1057_s21] sm:$0xff]  ;;  %v364_v9 = vld [vmem:[%s1057_s21 + $0x8] sm:$0xff]  ;;  %s664_s7 = sshll.u32 %s520_s6, 7  ;;  %s246_s8 = scalar_lea.vmem [#allocation3], %s639_s4 }
  0x1f   : > { %v739_v10 = vpack.c.bf16 %v279_v6, %v278_v4  ;;  %v742_v11 = vpack.c.bf16 %v364_v9, %v363_v7  ;;  %v365_v12 = vld [vmem:[%s1057_s21 + $0x10] sm:$0xff]  ;;  %v366_v13 = vld [vmem:[%s1057_s21 + $0x18] sm:$0xff]  ;;  %v281_v14 = vld [vmem:[%s253_s28] sm:$0xff]  ;;  %s524_s10 = sshll.u32 %s246_s8, 4  ;;  %s1110_s20 = scalar_lea.hbm %s1166_s3, %s664_s7  ;;  %s1112_s10 = int_to_ptr.vmem [resolvable:$true] %s524_s10 }
  0x20   : > { %737 = vmatpush3.bf16.msra.mxu0 %v736_v5  ;;  %v746_v15 = vpack.c.bf16 %v366_v13, %v365_v12  ;;  %v367_v16 = vld [vmem:[%s1057_s21 + $0x20] sm:$0xff]  ;;  %v368_v17 = vld [vmem:[%s1057_s21 + $0x28] sm:$0xff]  ;;  %v369_v19 = vld [vmem:[%s1057_s21 + $0x30] sm:$0xff]  ;;  %s507_s15 = scalar_lea.sflag [#allocation4], %s244_s29  ;;  %s850_s16 = scalar_lea.vmem %s1112_s10, 128 }
  0x21   : > { %738 = vmatprep.subr.bf16.mxu0 %v946_v0  ;;  %744 = vmatpush3.bf16.xpose.msk.msra.mxu1 %vm1063_vm2, %v742_v11  ;;  %v750_v18 = vpack.c.bf16 %v368_v17, %v367_v16  ;;  %v370_v20 = vld [vmem:[%s1057_s21 + $0x38] sm:$0xff]  ;;  %v371_v22 = vld [vmem:[%s1057_s21 + $0x40] sm:$0xff]  ;;  %v372_v23 = vld [vmem:[%s1057_s21 + $0x48] sm:$0xff]  ;;  %p851_p0 = scmp.ne.s32.totalorder %s1112_s10, %s850_s16 }
  0x22   : > { %745 = vmatprep.subr.bf16.mxu1 %v946_v0  ;;  %v754_v21 = vpack.c.bf16 %v370_v20, %v369_v19  ;;  %v758_v24 = vpack.c.bf16 %v372_v23, %v371_v22  ;;  %v373_v25 = vld [vmem:[%s1057_s21 + $0x50] sm:$0xff]  ;;  %v374_v26 = vld [vmem:[%s1057_s21 + $0x58] sm:$0xff]  ;;  %v375_v28 = vld [vmem:[%s1057_s21 + $0x60] sm:$0xff] }
  0x23   : > { %v762_v27 = vpack.c.bf16 %v374_v26, %v373_v25  ;;  %v376_v29 = vld [vmem:[%s1057_s21 + $0x68] sm:$0xff]  ;;  %v377_v31 = vld [vmem:[%s1057_s21 + $0x70] sm:$0xff]  ;;  %v378_v32 = vld [vmem:[%s1057_s21 + $0x78] sm:$0xff]  ;;  %p852_p1 = pnand %p851_p0, %p1022_p3  ;;  %s950_s21 = smov [#allocation3]  }
  0x24   : > { %740 = vmatpush3.bf16.msra.mxu0 %v739_v10  ;;  %v766_v30 = vpack.c.bf16 %v376_v29, %v375_v28  ;;  %v770_v33 = vpack.c.bf16 %v378_v32, %v377_v31  ;;  %v643_v35 = vld [vmem:[%s1049_s9 + $0x20] ss:$0 sm:$0xff]  ;;  %s854_s24 = sshll.u32 %s950_s21, 4  ;;  %s855_s24 = int_to_ptr.vmem [resolvable:$false] %s854_s24 }
  0x25   : > { %p853_p2 = pneg %p852_p1  ;;  %s856_s27 = scalar_lea.vmem %s855_s24, 256 }
  0x26   : > { %p857_p4 = scmp.lt.s32.totalorder %s1112_s10, %s855_s24  ;;  %p858_p5 = scmp.lt.s32.totalorder %s856_s27, %s850_s16 }
  0x27   : > { %698 = vmatmul.mubr.msk.f32.vlgmr.msra.gmra.mrb[0].mxu0 %vm286_vm1, %v281_v14 }
  0x28   : > { %p859_p6 = por %p858_p5, %p857_p4 }
  0x29   : > { %748 = vmatpush3.bf16.xpose.msk.msra.mxu1 %vm1063_vm2, %v746_v15 }
  0x2a   : > { %749 = vmatprep.subr.bf16.mxu1 %v946_v0  ;;  %p860_p7 = pnand %p859_p6, %p853_p2 }
  0x31   : > { %752 = vmatpush3.bf16.xpose.msk.msra.mxu1 %vm1063_vm2, %v750_v18 }
  0x32   : > { %753 = vmatprep.subr.bf16.mxu1 %v946_v0 }
  0x39   : > { %756 = vmatpush3.bf16.xpose.msk.msra.mxu1 %vm1063_vm2, %v754_v21 }
  0x3a   : > { %757 = vmatprep.subr.bf16.mxu1 %v946_v0 }
  0x41   : > { %760 = vmatpush3.bf16.xpose.msk.msra.mxu1 %vm1063_vm2, %v758_v24 }
  0x42   : > { %761 = vmatprep.subr.bf16.mxu1 %v946_v0 }
  0x49   : > { %764 = vmatpush3.bf16.xpose.msk.msra.mxu1 %vm1063_vm2, %v762_v27 }
  0x4a   : > { %765 = vmatprep.subr.bf16.mxu1 %v946_v0 }
  0x51   : > { %768 = vmatpush3.bf16.xpose.msk.msra.mxu1 %vm1063_vm2, %v766_v30 }
  0x52   : > { %769 = vmatprep.subr.bf16.mxu1 %v946_v0 }
  0x59   : > { %772 = vmatpush3.bf16.xpose.msk.msra.mxu1 %vm1063_vm2, %v770_v33 }
  0xfa   : > { %v356_v36 = vpop.f32.mrb[0].mxu0 }
  0xfb   : > { %v357_v37 = vadd.f32 %v643_v35, %v356_v36  ;;  %v699_v38 = vpop.f32.mrb[1].mxu0 }
  0xfd   : > { %361 = vst.msk [vmem:[#allocation2] sm:$0xff] %vm360_vm3, %v357_v37 }
 0x104   : > { %v362_v39 = vld [vmem:[#allocation2] sm:$0xff] }
 0x105   : > { %381 = vperm.xlu0 %849, %v362_v39   ;;  %733 = vmatmul.mubr.msk.f32.vlgmr.msra.gmra.mrb[0].mxu1 %vm286_vm1, %v362_v39 }
 0x184   : > { %v382_v40 = vpop.permute.xlu0 %381 }
 0x1d8   : > { %v501_v41 = vpop.f32.mrb[0].mxu1 }
 0x1d9   : > { %v502_v42 = vadd.f32 %v501_v41, %v382_v40  ;;  %v734_v43 = vpop.f32.mrb[1].mxu1 }
 0x1db   : > { %505 = vst [vmem:[%s246_s8] sm:$0xff] %v502_v42 }
 0x1dc   : > { %863 = shalt.err (!%p860_p7)
}
 0x1dd   : > { %s864_s28 = scalar_lea.hbm %s1110_s20, 128  ;;  %s868_s5 = scalar_lea.hbm %s1166_s3, 1024 }
 0x1de   : > { %p865_p9 = scmp.ne.s32.totalorder %s1110_s20, %s864_s28  ;;  %p869_p12 = scmp.lt.u32.totalorder %s1110_s20, %s1166_s3 }
 0x1df   : > { %p870_p13 = scmp.lt.u32.totalorder %s868_s5, %s864_s28  ;;  %p872_p1 = scmp.lt.u32.totalorder %s864_s28, %s1110_s20 }
 0x1e0   : > { %p866_p10 = pnand %p865_p9, %p1022_p3 }
 0x1e1   : > { %p871_p0 = por %p870_p13, %p869_p12 }
 0x1e2   : > { %p867_p11 = pneg %p866_p10 }
 0x1e3   : > { %p873_p2 = por %p872_p1, %p871_p0 }
 0x1e5   : > { %p874_p4 = pnand %p873_p2, %p867_p11 }
 0x1e7   : > { %877 = shalt.err (!%p874_p4)
}
 0x1e8   : > { %774 = dma.vmem_to_hbm [thread:$0]  (%p1022_p3), %s1112_s10, 128, %s1110_s20, %s507_s15  }
 0x1e9 PF: > { %p780_p5 = scmp.ge.s32.totalorder %s944_s19, 2  ;;  %s536_s8 = sand.u32 1, %s916_s12  }
 0x1ea   : > { %s537_s9 = scalar_lea.sflag [#allocation4], %s536_s8 }
 0x1eb   : > { %p777_p6 = pnand %p780_p5, %p1031_p8 }
 0x1ed   : > { %911 = dma.done.wait (!%p777_p6), %s537_s9, 128  }
 0x1ee   : > { %913 = vsyncadd (!%p777_p6), %s537_s9, 4294967168  ;;  %s16_s19 = sadd.s32 1, %s944_s19   ;;  %s1171_s12 = smov %s920_s13 }
 0x1ef   : > { %p13_p7 = scmp.ge.s32.totalorder %s16_s19, 10   ;;  %s1172_s13 = smov %s924_s14 }
 0x1f0   : > { %s1173_s14 = smov %s1040_s30  ;;  %s1174_s15 = smov %s936_s17 }
 0x1f1   : > { %s1175_s16 = smov %s940_s18  ;;  %s1176_s17 = smov %s1179_s22 }
 0x1f2   : > { %s1177_s18 = smov %s1183_s23  ;;  %15 = sbr.rel (!%p13_p7) target bundleno = 5 (0x5), region = 77 }
 0x1f9   :  { %542 = vsyncpa [#allocation4], 1 }
 0x1fa   :  { %544 = vsyncpa [#allocation4 + $0x1], 1 }

</bundles_post_ra>
